<compile_context>
chip_gen: v7x
topology: tpu7x:2x2x1
jax: 0.10.0
libtpu: 0.0.40
codegen_flags: <defaults>
</compile_context>

<pallas_src>
import functools

import numpy as np
import jax
import jax.numpy as jnp
from jax.experimental import pallas as pl
from jax.experimental.pallas import tpu as pltpu

ARRANGE = np.array([28, 29, 30, 31, 0, 4, 8, 12, 24, 25, 26, 27, 1, 5, 9, 13,
                    20, 21, 22, 23, 2, 6, 10, 14, 16, 17, 18, 19, 3, 7, 11, 15,
                    47, 43, 39, 35, 35, 34, 33, 32, 46, 42, 38, 34, 39, 38, 37, 36,
                    45, 41, 37, 33, 43, 42, 41, 40, 44, 40, 36, 32, 47, 46, 45, 44])
ARRMASK = np.array([1, 1, 1, 1, 1, 1, 1, 1, 1, 1, 1, 1, 1, 1, 1, 1,
                    1, 1, 1, 1, 1, 1, 1, 1, 1, 1, 1, 1, 1, 1, 1, 1,
                    1, 1, 1, 1, 0, 0, 0, 0, 1, 1, 1, 1, 0, 0, 0, 0,
                    1, 1, 1, 1, 0, 0, 0, 0, 1, 1, 1, 1, 0, 0, 0, 0])

LATENT_DIMS = 4  # present in __init__ but unused by forward()


# ---------------------------------------------------------------------------
# Pallas kernel: two lane-aligned matmuls, masked ReLUs, (TB,17) output store
# ---------------------------------------------------------------------------
def encoder_kernel(x_ref, w1_ref, b1_ref, w2_ref, out_ref):
    w1 = w1_ref[...]
    xv = x_ref[...]
    if xv.dtype != w1.dtype:                       # trace-time branch (dtypes static)
        xv = xv.astype(w1.dtype)

    # Stage 1: fused (gather + im2col + conv) matmul.
    #   lanes 0:71  = conv features, lane 72 = c (ones column), lane 73 = 1.0
    feat = jnp.dot(xv, w1, preferred_element_type=jnp.float32) + b1_ref[...]
    lane = jax.lax.broadcasted_iota(jnp.int32, (1, 128), 1)      # built once, broadcasts
    feat = jnp.where(lane < 72, jnp.maximum(feat, 0.0), feat)    # keep c / const lanes

    # Stage 2: Linear(73,16) + bias folded into W2 (row 72 = c column,
    # row 73 = lin_b via the constant-1 lane); result lane 16 = c pass-through.
    w2 = w2_ref[...]
    f2 = feat if feat.dtype == w2.dtype else feat.astype(w2.dtype)
    out = jnp.dot(f2, w2, preferred_element_type=jnp.float32)
    out = jnp.where(lane < 16, jnp.maximum(out, 0.0), out)       # keep c unclipped

    out_ref[...] = out[:, :17].astype(out_ref.dtype)             # direct (TB,17) store


# ---------------------------------------------------------------------------
# Host-side parameter packing (pure glue, all static / deterministic)
# ---------------------------------------------------------------------------
def build_static_operands(conv_w, conv_b, lin_w, lin_b, compute_dtype=jnp.float32):
    # which x column feeds grid cell (r, cc); -1 => masked to zero
    grid_idx = np.where(ARRMASK == 1, ARRANGE, -1).reshape(8, 8)

    S = np.zeros((48, 81), dtype=np.float32)      # x -> im2col patches
    Wbig = np.zeros((81, 72), dtype=np.float32)   # block-diag conv weights
    conv_w_np = np.asarray(conv_w, dtype=np.float32)   # (8, 1, 3, 3)

    for oh in range(3):
        for ow in range(3):
            p = oh * 3 + ow
            for kh in range(3):
                for kw in range(3):
                    k = kh * 3 + kw
                    src = grid_idx[oh * 2 + kh, ow * 2 + kw]
                    if src >= 0:
                        S[src, p * 9 + k] = 1.0
                    for co in range(8):
                        Wbig[p * 9 + k, p * 8 + co] = conv_w_np[co, 0, kh, kw]

    # Fold the two static matmuls into one: x @ (S @ Wbig)
    W_comb = S @ Wbig                                    # (48, 72), [pos, ch] layout

    # Stage-1 slab: lanes 0:71 conv features, lane 72 ones column (-> c)
    W1_pad = np.zeros((48, 128), dtype=np.float32)
    W1_pad[:, :72] = W_comb
    W1_pad[:, 72] = 1.0
    b1_pad = np.zeros((1, 128), dtype=np.float32)
    b1_pad[0, :72] = np.tile(np.asarray(conv_b, dtype=np.float32), 9)
    b1_pad[0, 73] = 1.0           # constant-1 lane: feeds lin_b through W2 row 73

    # Stage-2 slab: Linear(73,16) permuted from torch's [ch, pos] flatten order
    # to our [pos, ch] order; row 72 multiplies c; [72,16]=1 passes c; row 73 = bias.
    W1T = np.asarray(lin_w, dtype=np.float32).T          # (73, 16)
    w1f = W1T[:72].reshape(8, 9, 16).transpose(1, 0, 2).reshape(72, 16)
    w1c = W1T[72]                                        # (16,)
    W2_pad = np.zeros((128, 128), dtype=np.float32)
    W2_pad[:72, :16] = w1f
    W2_pad[72, :16] = w1c
    W2_pad[72, 16] = 1.0
    W2_pad[73, :16] = np.asarray(lin_b, dtype=np.float32)

    # Padding-region invariants: the unclipped lanes (>=72 stage 1, >=16 stage 2)
    # rely on these being exactly zero / exactly what the routing expects.
    assert np.all(W1_pad[:, 73:] == 0.0)
    assert b1_pad[0, 72] == 0.0 and np.all(b1_pad[0, 74:] == 0.0)
    assert np.all(W2_pad[:, 17:] == 0.0)
    assert np.all(W2_pad[74:, :] == 0.0)
    col16 = W2_pad[:, 16]
    assert col16[72] == 1.0 and np.all(np.delete(col16, 72) == 0.0)

    dt = jnp.dtype(compute_dtype)
    return (jnp.asarray(W1_pad, dt),                  # W1 (matmul operand)
            jnp.asarray(b1_pad, jnp.float32),         # b1 stays f32 (added to f32 acc)
            jnp.asarray(W2_pad, dt))                  # W2 (matmul operand)


def _pallas_forward(x, W1, b1, W2, TB):
    B = x.shape[0]
    grid = (pl.cdiv(B, TB),)
    x_bytes = jnp.dtype(x.dtype).itemsize
    w_bytes = jnp.dtype(W1.dtype).itemsize
    cost = pl.CostEstimate(
        flops=2 * B * (48 * 128 + 128 * 128),
        transcendentals=0,
        bytes_accessed=B * (48 * x_bytes + 17 * 4)
        + (48 * 128 + 128 * 128) * w_bytes + 128 * 4,
    )
    return pl.pallas_call(
        encoder_kernel,
        out_shape=jax.ShapeDtypeStruct((B, 17), jnp.float32),
        grid_spec=pltpu.PrefetchScalarGridSpec(
            num_scalar_prefetch=0,
            grid=grid,
            in_specs=[
                pl.BlockSpec((TB, 48), lambda i: (i, 0)),     # x tile (pipelined)
                pl.BlockSpec((48, 128), lambda i: (0, 0)),    # W1 (VMEM-resident)
                pl.BlockSpec((1, 128), lambda i: (0, 0)),     # b1
                pl.BlockSpec((128, 128), lambda i: (0, 0)),   # W2
            ],
            out_specs=pl.BlockSpec((TB, 17), lambda i: (i, 0)),   # direct 17-lane out
        ),
        compiler_params=pltpu.CompilerParams(
            dimension_semantics=("parallel",),                # megacore on v7x
            vmem_limit_bytes=48 * 1024 * 1024,                # headroom for big TB
        ),
        cost_estimate=cost,
    )(x, W1, b1, W2)


def _choose_tile(B, tb):
    """Batch tile: aim for ~8 grid steps (pipelining / megacore), cap at tb."""
    if B <= 8:
        return B                       # single full-array block (tiny batch)
    TB = -(-B // 8)                    # cdiv(B, 8) -> ~8 steps
    TB = ((TB + 7) // 8) * 8           # sublane-aligned
    return max(8, min(TB, tb))


@functools.partial(jax.jit, static_argnames=("tb",))
def cae_encoder_forward(x, W1, b1, W2, tb=4096):
    """Forward pass. Returns (B, 17) = [relu(Linear(conv_feats ++ c)), c]."""
    B, F = x.shape
    assert F == 48, "expected 48-wide trigger-cell input"
    TB = _choose_tile(B, tb)
    return _pallas_forward(x, W1, b1, W2, TB)


# ---------------------------------------------------------------------------
# Pure-JAX reference that mirrors the torch forward exactly (for validation)
# ---------------------------------------------------------------------------
def reference_forward(x, conv_w, conv_b, lin_w, lin_b):
    B = x.shape[0]
    c = jnp.sum(x[:, :48], axis=1, keepdims=True)
    inputdata = x[:, ARRANGE] * jnp.asarray(ARRMASK, jnp.float32)[None, :]
    grid = inputdata.reshape(B, 1, 8, 8)
    y = jax.lax.conv_general_dilated(
        grid, conv_w, window_strides=(2, 2), padding="VALID",
        dimension_numbers=("NCHW", "OIHW", "NCHW"))
    y = jax.nn.relu(y + conv_b.reshape(1, 8, 1, 1))
    flat = y.reshape(B, 72)                      # torch flatten: [ch, pos]
    h = jnp.concatenate([flat, c], axis=1)       # (B, 73)
    out16 = jax.nn.relu(h @ lin_w.T + lin_b)     # Linear(73, 16) + ReLU
    return jnp.concatenate([out16, c], axis=1)   # (B, 17)


if __name__ == "__main__":
    key = jax.random.PRNGKey(0)
    kx, kcw, kcb, klw, klb = jax.random.split(key, 5)

    # Deterministic parameter init; shapes follow the module's __init__.
    conv_w = jax.random.normal(kcw, (8, 1, 3, 3), dtype=jnp.float32) / 3.0
    conv_b = jax.random.normal(kcb, (8,), dtype=jnp.float32) * 0.1
    lin_w = jax.random.normal(klw, (16, 73), dtype=jnp.float32) / np.sqrt(73.0)
    lin_b = jax.random.normal(klb, (16,), dtype=jnp.float32) * 0.1

    ops_f32 = build_static_operands(conv_w, conv_b, lin_w, lin_b)

    # Small batch (B = 2): single full-array block.
    B = 2
    x = jax.random.normal(kx, (B, 48), dtype=jnp.float32)
    out = jax.block_until_ready(cae_encoder_forward(x, *ops_f32))
    ref = reference_forward(x, conv_w, conv_b, lin_w, lin_b)
    assert out.shape == (B, 17)
    np.testing.assert_allclose(np.asarray(out), np.asarray(ref),
                               rtol=1e-4, atol=1e-4)

    # Multi-step grid with a ragged last block (no host-side padding, no slice).
    B2 = 20
    x2 = jax.random.normal(kx, (B2, 48), dtype=jnp.float32)
    out2 = jax.block_until_ready(cae_encoder_forward(x2, *ops_f32, tb=8))
    ref2 = reference_forward(x2, conv_w, conv_b, lin_w, lin_b)
    assert out2.shape == (B2, 17)
    np.testing.assert_allclose(np.asarray(out2), np.asarray(ref2),
                               rtol=1e-4, atol=1e-4)

    # Default tile path: TB chosen for ~8 pipelined steps, ragged tail block.
    B3 = 1000
    x3 = jax.random.normal(kx, (B3, 48), dtype=jnp.float32)
    out3 = jax.block_until_ready(cae_encoder_forward(x3, *ops_f32))
    ref3 = reference_forward(x3, conv_w, conv_b, lin_w, lin_b)
    assert out3.shape == (B3, 17)
    np.testing.assert_allclose(np.asarray(out3), np.asarray(ref3),
                               rtol=1e-4, atol=1e-4)

    # Optional bf16 weight packing (v5e MXU relief); f32 accumulation kept,
    # tolerance loosened for bf16 rounding.
    ops_bf16 = build_static_operands(conv_w, conv_b, lin_w, lin_b,
                                     compute_dtype=jnp.bfloat16)
    out4 = jax.block_until_ready(cae_encoder_forward(x3, *ops_bf16))
    np.testing.assert_allclose(np.asarray(out4), np.asarray(ref3),
                               rtol=1e-1, atol=3e-1)

    print("KERNEL_OK")
</pallas_src>

<mosaic_0001>
module attributes {stable_mosaic.version = 11 : i64} {
  func.func @encoder_kernel(%arg0: i32, %arg1: memref<2x48xf32, #tpu.memory_space<vmem>>, %arg2: memref<48x128xf32, #tpu.memory_space<vmem>>, %arg3: memref<1x128xf32, #tpu.memory_space<vmem>>, %arg4: memref<128x128xf32, #tpu.memory_space<vmem>>, %arg5: memref<2x17xf32, #tpu.memory_space<vmem>>) attributes {dimension_semantics = [#tpu.dimension_semantics<parallel>], iteration_bounds = array<i64: 1>, scalar_prefetch = 0 : i64, scratch_operands = 0 : i64, tpu.core_type = #tpu.core_type<tc>, window_params = [{transform_indices = @transform_0, window_bounds = array<i64: 2, 48>}, {pipeline_mode = #tpu.pipeline_mode<synchronous>, transform_indices = @transform_1, window_bounds = array<i64: 48, 128>}, {pipeline_mode = #tpu.pipeline_mode<synchronous>, transform_indices = @transform_2, window_bounds = array<i64: 1, 128>}, {pipeline_mode = #tpu.pipeline_mode<synchronous>, transform_indices = @transform_3, window_bounds = array<i64: 128, 128>}, {transform_indices = @transform_4, window_bounds = array<i64: 2, 17>}]} {
    %c0 = arith.constant 0 : index
    %c0_0 = arith.constant 0 : index
    %0 = vector.load %arg2[%c0, %c0_0] : memref<48x128xf32, #tpu.memory_space<vmem>>, vector<48x128xf32>
    %c0_1 = arith.constant 0 : index
    %c0_2 = arith.constant 0 : index
    %1 = vector.load %arg1[%c0_1, %c0_2] : memref<2x48xf32, #tpu.memory_space<vmem>>, vector<2x48xf32>
    %cst = arith.constant dense<0.000000e+00> : vector<2x128xf32>
    %2 = tpu.matmul %1, %0, %cst {dimension_numbers = #tpu.dot_dimension_numbers<[1], [0], [0], [1], [0, 0, 1, 1], [], []>} : vector<2x48xf32>, vector<48x128xf32>, vector<2x128xf32> -> vector<2x128xf32>
    %c0_3 = arith.constant 0 : index
    %c0_4 = arith.constant 0 : index
    %3 = vector.load %arg3[%c0_3, %c0_4] : memref<1x128xf32, #tpu.memory_space<vmem>>, vector<1x128xf32>
    %4 = vector.broadcast %3 : vector<1x128xf32> to vector<2x128xf32>
    %5 = arith.addf %2, %4 : vector<2x128xf32>
    %6 = tpu.iota {dimensions = array<i32: 1>} : vector<1x128xi32>
    %c72_i32 = arith.constant 72 : i32
    %7 = vector.broadcast %c72_i32 : i32 to vector<1x128xi32>
    %8 = arith.cmpi slt, %6, %7 : vector<1x128xi32>
    %cst_5 = arith.constant 0.000000e+00 : f32
    %9 = vector.broadcast %cst_5 : f32 to vector<2x128xf32>
    %10 = arith.maximumf %5, %9 : vector<2x128xf32>
    %11 = vector.shape_cast %8 : vector<1x128xi1> to vector<1x128xi1>
    %12 = vector.broadcast %11 : vector<1x128xi1> to vector<2x128xi1>
    %13 = arith.select %12, %10, %5 : vector<2x128xi1>, vector<2x128xf32>
    %c0_6 = arith.constant 0 : index
    %c0_7 = arith.constant 0 : index
    %14 = vector.load %arg4[%c0_6, %c0_7] : memref<128x128xf32, #tpu.memory_space<vmem>>, vector<128x128xf32>
    %cst_8 = arith.constant dense<0.000000e+00> : vector<2x128xf32>
    %15 = tpu.matmul %13, %14, %cst_8 {dimension_numbers = #tpu.dot_dimension_numbers<[1], [0], [0], [1], [0, 0, 1, 1], [], []>} : vector<2x128xf32>, vector<128x128xf32>, vector<2x128xf32> -> vector<2x128xf32>
    %c16_i32 = arith.constant 16 : i32
    %16 = vector.broadcast %c16_i32 : i32 to vector<1x128xi32>
    %17 = arith.cmpi slt, %6, %16 : vector<1x128xi32>
    %cst_9 = arith.constant 0.000000e+00 : f32
    %18 = vector.broadcast %cst_9 : f32 to vector<2x128xf32>
    %19 = arith.maximumf %15, %18 : vector<2x128xf32>
    %20 = vector.shape_cast %17 : vector<1x128xi1> to vector<1x128xi1>
    %21 = vector.broadcast %20 : vector<1x128xi1> to vector<2x128xi1>
    %22 = arith.select %21, %19, %15 : vector<2x128xi1>, vector<2x128xf32>
    %23 = vector.extract_strided_slice %22 {offsets = [0, 0], sizes = [2, 17], strides = [1, 1]} : vector<2x128xf32> to vector<2x17xf32>
    %c0_10 = arith.constant 0 : index
    %c0_11 = arith.constant 0 : index
    %24 = vector.load %arg5[%c0_10, %c0_11] : memref<2x17xf32, #tpu.memory_space<vmem>>, vector<2x17xf32>
    tpu.vector_store %arg5[%c0_10, %c0_11], %23 {strides = array<i32>} : memref<2x17xf32, #tpu.memory_space<vmem>>, vector<2x17xf32>,
    return
  }
  func.func @transform_0(%arg0: i32) -> (i32, i32) {
    %c0_i32 = arith.constant 0 : i32
    %c0_i32_0 = arith.constant 0 : i32
    return %arg0, %c0_i32 : i32, i32
  }
  func.func @transform_1(%arg0: i32) -> (i32, i32) {
    %c0_i32 = arith.constant 0 : i32
    %c0_i32_0 = arith.constant 0 : i32
    %c0_i32_1 = arith.constant 0 : i32
    return %c0_i32, %c0_i32_0 : i32, i32
  }
  func.func @transform_2(%arg0: i32) -> (i32, i32) {
    %c0_i32 = arith.constant 0 : i32
    %c0_i32_0 = arith.constant 0 : i32
    %c0_i32_1 = arith.constant 0 : i32
    return %c0_i32, %c0_i32_0 : i32, i32
  }
  func.func @transform_3(%arg0: i32) -> (i32, i32) {
    %c0_i32 = arith.constant 0 : i32
    %c0_i32_0 = arith.constant 0 : i32
    %c0_i32_1 = arith.constant 0 : i32
    return %c0_i32, %c0_i32_0 : i32, i32
  }
  func.func @transform_4(%arg0: i32) -> (i32, i32) {
    %c0_i32 = arith.constant 0 : i32
    %c0_i32_0 = arith.constant 0 : i32
    return %arg0, %c0_i32 : i32, i32
  }
}

</mosaic_0001>

<bundles_post_ra>
// kernel: cae_encoder_forward.1
= control target key start
LH: loop header
LB: loop body
LE: loop exit
PB: predicated region body
PF: predicated region fallthrough
CT: control target
= control target key end

     0   :  { %9 = vsyncpa [#allocation3], 0  ;;  %s564_s0 = inlined_call_operand.hbm [shape: f32[2,48], index: 0, kind: input, shape index: {}]   ;;  %s565_s1 = inlined_call_operand.hbm [shape: f32[48,128], index: 1, kind: input, shape index: {}]   ;;  %s566_s2 = inlined_call_operand.vmem [shape: f32[1,128], index: 2, kind: input, shape index: {}]   ;;  %s567_s3 = inlined_call_operand.hbm [shape: f32[128,128], index: 3, kind: input, shape index: {}]   ;;  %s568_s4 = inlined_call_operand.hbm [shape: f32[2,17], index: 4, kind: output, shape index: {}]  }
   0x1   :  { %10 = vsyncpa [#allocation6], 0 }
   0x2   :  { %11 = vsyncpa [#allocation4], 0  ;;  %s473_s15 = smov [#allocation5]   ;;  %s379_s19 = scalar_lea.hbm %s565_s1, 768 }
   0x3   :  { %s27_s16 = sshll.u32 %s473_s15, 4  ;;  %p380_p0 = scmp.ne.s32.totalorder %s565_s1, %s379_s19  ;;  %s28_s16 = int_to_ptr.vmem [resolvable:$true] %s27_s16 }
   0x4   :  { %p383_p1 = scmp.lt.u32.totalorder %s379_s19, %s565_s1 }
   0x6   :  { %p385_p2 = pnand %p383_p1, %p380_p0 }
   0x8   :  { %388 = shalt.err (!%p385_p2)
}
   0x9   :  { %s389_s24 = scalar_lea.vmem %s28_s16, 768  ;;  %p394_p4 = scmp.lt.s32.totalorder %s28_s16, %s28_s16 }
   0xa   :  { %p390_p3 = scmp.ne.s32.totalorder %s28_s16, %s389_s24  ;;  %p395_p5 = scmp.lt.s32.totalorder %s389_s24, %s389_s24 }
   0xc   :  { %p396_p6 = por %p395_p5, %p394_p4 }
   0xe   :  { %p397_p7 = pnand %p396_p6, %p390_p3 }
  0x10   :  { %400 = shalt.err (!%p397_p7)
}
  0x11   :  { %s474_s25 = smov 128   ;;  %s475_s26 = smov 8  }
  0x12   :  { %33 = dma.hbm_to_vmem [thread:$0]  %s565_s1, 768, %s28_s16, [#allocation6], %s474_s25, %s474_s25, %s475_s26  }
  0x13   :  { %s476_s29 = smov [#allocation2]   ;;  %s477_s5 = smov [#allocation7]  }
  0x14   :  { %s18_s30 = sshll.u32 %s476_s29, 4  ;;  %s41_s6 = sshll.u32 %s477_s5, 4  ;;  %s19_s30 = int_to_ptr.vmem [resolvable:$true] %s18_s30  ;;  %s42_s6 = int_to_ptr.vmem [resolvable:$true] %s41_s6 }
  0x15   :  { %s401_s9 = scalar_lea.hbm %s564_s0, 32 }
  0x16   :  { %p402_p8 = scmp.ne.s32.totalorder %s564_s0, %s401_s9  ;;  %p405_p9 = scmp.lt.u32.totalorder %s401_s9, %s564_s0 }
  0x18   :  { %p407_p10 = pnand %p405_p9, %p402_p8 }
  0x1a   :  { %410 = shalt.err (!%p407_p10)
}
  0x1b   :  { %s411_s1 = scalar_lea.vmem %s19_s30, 32  ;;  %p416_p12 = scmp.lt.s32.totalorder %s19_s30, %s19_s30 }
  0x1c   :  { %p412_p11 = scmp.ne.s32.totalorder %s19_s30, %s411_s1  ;;  %p417_p13 = scmp.lt.s32.totalorder %s411_s1, %s411_s1 }
  0x1e   :  { %p418_p0 = por %p417_p13, %p416_p12 }
  0x20   :  { %p419_p1 = pnand %p418_p0, %p412_p11 }
  0x22   :  { %422 = shalt.err (!%p419_p1)
}
  0x23   :  { %21 = dma.hbm_to_vmem [thread:$0]  %s564_s0, 32, %s19_s30, [#allocation3]  }
  0x24   :  { %s423_s18 = scalar_lea.hbm %s567_s3, 2048 }
  0x25   :  { %p424_p2 = scmp.ne.s32.totalorder %s567_s3, %s423_s18  ;;  %p427_p3 = scmp.lt.u32.totalorder %s423_s18, %s567_s3 }
  0x27   :  { %p429_p4 = pnand %p427_p3, %p424_p2 }
  0x29   :  { %432 = shalt.err (!%p429_p4)
}
  0x2a   :  { %s433_s23 = scalar_lea.vmem %s42_s6, 2048  ;;  %p438_p6 = scmp.lt.s32.totalorder %s42_s6, %s42_s6 }
  0x2b   :  { %p434_p5 = scmp.ne.s32.totalorder %s42_s6, %s433_s23  ;;  %p439_p7 = scmp.lt.s32.totalorder %s433_s23, %s433_s23 }
  0x2d   :  { %p440_p8 = por %p439_p7, %p438_p6 }
  0x2f   :  { %p441_p9 = pnand %p440_p8, %p434_p5 }
  0x31   :  { %444 = shalt.err (!%p441_p9)
}
  0x32   :  { %47 = dma.hbm_to_vmem [thread:$0]  %s567_s3, 2048, %s42_s6, [#allocation6], %s474_s25, %s474_s25, %s475_s26  }
  0x33   :  { %467 = dma.done.wait [#allocation3], 32  }
  0x34   :  { %468 = vsyncadd [#allocation3], 4294967264 }
  0x35   :  { %469 = dma.done.wait [#allocation6], 2816  }
  0x36   :  { %470 = vsyncadd [#allocation6], 4294964480  ;;  %v478_v0 = vmov 0.0|0.0   ;;  %vm479_vm0 = vmmov 0   ;;  %v480_v1 = vmov 0.0   ;;  %v57_v2 = vld [vmem:[#allocation5] sm:$0xff]  ;;  %v145_v36 = vlaneseq }
  0x37   :  { %337 = vmatprep.subr.bf16.mxu0 %v478_v0  ;;  %299 = vmatprep.mubr.msk.f32.mxu0 %vm479_vm0, %v480_v1  ;;  %v58_v3 = vld [vmem:[#allocation5 + $0x8] sm:$0xff]  ;;  %v59_v4 = vld [vmem:[#allocation5 + $0x10] sm:$0xff]  ;;  %v60_v6 = vld [vmem:[#allocation5 + $0x18] sm:$0xff]  ;;  %vm71_vm1 = vcmask 392192   ;;  %s481_s26 = smov [#allocation8]   ;;  %vm243_vm4 = vcmask 132096  }
  0x38   :  { %346 = vmatprep.subr.bf16.mxu1 %v478_v0  ;;  %334 = vmatprep.mubr.msk.f32.mxu1 %vm479_vm0, %v480_v1  ;;  %v338_v5 = vpack.c.bf16 %v58_v3, %v57_v2  ;;  %v152_v7 = vld [vmem:[#allocation7] sm:$0xff]  ;;  %v153_v8 = vld [vmem:[#allocation7 + $0x8] sm:$0xff]  ;;  %v341_v9 = vpack.c.bf16 %v60_v6, %v59_v4  ;;  %v154_v11 = vld [vmem:[#allocation7 + $0x10] sm:$0xff]  ;;  %v146_v38 = vand.u32 127, %v145_v36  ;;  %s251_s27 = sshll.u32 %s481_s26, 4  ;;  %s252_s27 = int_to_ptr.vmem [resolvable:$true] %s251_s27 }
  0x39   :  { %v347_v10 = vpack.c.bf16 %v153_v8, %v152_v7  ;;  %v155_v12 = vld [vmem:[#allocation7 + $0x18] sm:$0xff]  ;;  %v61_v13 = vld [vmem:[#allocation5 + $0x20] sm:$0xff]  ;;  %v156_v16 = vld [vmem:[#allocation7 + $0x20] sm:$0xff]  ;;  %s445_s28 = scalar_lea.vmem %s252_s27, 32  ;;  %p450_p11 = scmp.lt.s32.totalorder %s252_s27, %s252_s27 }
  0x3a   :  { %339 = vmatpush3.bf16.msra.mxu0 %v338_v5  ;;  %v62_v14 = vld [vmem:[#allocation5 + $0x28] sm:$0xff]  ;;  %v350_v15 = vpack.c.bf16 %v155_v12, %v154_v11  ;;  %v157_v17 = vld [vmem:[#allocation7 + $0x28] sm:$0xff]  ;;  %v158_v20 = vld [vmem:[#allocation7 + $0x30] sm:$0xff]  ;;  %vm147_vm2 = vcmp.lt.s32.totalorder %v146_v38, 72  ;;  %vm238_vm3 = vcmp.lt.s32.totalorder %v146_v38, 16  ;;  %p446_p10 = scmp.ne.s32.totalorder %s252_s27, %s445_s28  ;;  %p451_p12 = scmp.lt.s32.totalorder %s445_s28, %s445_s28 }
  0x3b   :  { %340 = vmatprep.subr.bf16.mxu0 %v478_v0  ;;  %348 = vmatpush3.bf16.msra.mxu1 %v347_v10  ;;  %v344_v18 = vpack.c.bf16 %v62_v14, %v61_v13  ;;  %v353_v19 = vpack.c.bf16 %v157_v17, %v156_v16  ;;  %v159_v21 = vld [vmem:[#allocation7 + $0x38] sm:$0xff]  ;;  %v63_v22 = vld [vmem:[#allocation2] sm:$0x3]  ;;  %v160_v24 = vld [vmem:[#allocation7 + $0x40] sm:$0xff] }
  0x3c   :  { %349 = vmatprep.subr.bf16.mxu1 %v478_v0  ;;  %v356_v23 = vpack.c.bf16 %v159_v21, %v158_v20  ;;  %v161_v25 = vld [vmem:[#allocation7 + $0x48] sm:$0xff]  ;;  %v162_v27 = vld [vmem:[#allocation7 + $0x50] sm:$0xff]  ;;  %v163_v28 = vld [vmem:[#allocation7 + $0x58] sm:$0xff]  ;;  %p452_p13 = por %p451_p12, %p450_p11 }
  0x3d   :  { %v359_v26 = vpack.c.bf16 %v161_v25, %v160_v24  ;;  %v362_v29 = vpack.c.bf16 %v163_v28, %v162_v27  ;;  %v164_v30 = vld [vmem:[#allocation7 + $0x60] sm:$0xff]  ;;  %v165_v31 = vld [vmem:[#allocation7 + $0x68] sm:$0xff]  ;;  %v166_v33 = vld [vmem:[#allocation7 + $0x70] sm:$0xff] }
  0x3e   :  { %342 = vmatpush3.bf16.msra.mxu0 %v341_v9  ;;  %v365_v32 = vpack.c.bf16 %v165_v31, %v164_v30  ;;  %v167_v34 = vld [vmem:[#allocation7 + $0x78] sm:$0xff]  ;;  %v261_v37 = vld [vmem:[%s566_s2] ss:$0 sm:$0xff]  ;;  %p453_p0 = pnand %p452_p13, %p446_p10 }
  0x3f   :  { %343 = vmatprep.subr.bf16.mxu0 %v478_v0  ;;  %351 = vmatpush3.bf16.msra.mxu1 %v350_v15  ;;  %v368_v35 = vpack.c.bf16 %v167_v34, %v166_v33 }
  0x40   :  { %352 = vmatprep.subr.bf16.mxu1 %v478_v0 }
  0x42   :  { %345 = vmatpush3.bf16.msra.mxu0 %v344_v18 }
  0x43   :  { %354 = vmatpush3.bf16.msra.mxu1 %v353_v19 }
  0x44   :  { %355 = vmatprep.subr.bf16.mxu1 %v478_v0 }
  0x45   :  { %300 = vmatmul.mubr.msk.f32.vlgmr.msra.gmra.mrb[0].mxu0 %vm71_vm1, %v63_v22 }
  0x47   :  { %357 = vmatpush3.bf16.msra.mxu1 %v356_v23 }
  0x48   :  { %358 = vmatprep.subr.bf16.mxu1 %v478_v0 }
  0x4b   :  { %360 = vmatpush3.bf16.msra.mxu1 %v359_v26 }
  0x4c   :  { %361 = vmatprep.subr.bf16.mxu1 %v478_v0 }
  0x4f   :  { %363 = vmatpush3.bf16.msra.mxu1 %v362_v29 }
  0x50   :  { %364 = vmatprep.subr.bf16.mxu1 %v478_v0 }
  0x53   :  { %366 = vmatpush3.bf16.msra.mxu1 %v365_v32 }
  0x54   :  { %367 = vmatprep.subr.bf16.mxu1 %v478_v0 }
  0x57   :  { %369 = vmatpush3.bf16.msra.mxu1 %v368_v35 }
 0x118   :  { %v141_v39 = vpop.f32.mrb[0].mxu0 }
 0x119   :  { %v142_v40 = vadd.f32 %v261_v37, %v141_v39  ;;  %v301_v41 = vpop.f32.mrb[1].mxu0 }
 0x11b   :  { %v148_v42 = vmax.f32 %v142_v40, 0.0 }
 0x11d   :  { %v151_v43 = vsel %vm147_vm2, %v148_v42, %v142_v40 }
 0x11e   :  { %335 = vmatmul.mubr.f32.vlgmr.msra.gmra.mrb[0].mxu1 %v151_v43 }
 0x1f1   :  { %v234_v44 = vpop.f32.mrb[0].mxu1 }
 0x1f2   :  { %v239_v45 = vmax.f32 %v234_v44, 0.0  ;;  %v336_v46 = vpop.f32.mrb[1].mxu1 }
 0x1f4   :  { %v242_v47 = vsel %vm238_vm3, %v239_v45, %v234_v44 }
 0x1f5   :  { %244 = vst.msk [vmem:[#allocation8] sm:$0x3] %vm243_vm4, %v242_v47 }
 0x1f6   :  { %456 = shalt.err (!%p453_p0)
}
 0x1f7   :  { %s457_s30 = scalar_lea.hbm %s568_s4, 32 }
 0x1f8   :  { %p458_p1 = scmp.ne.s32.totalorder %s568_s4, %s457_s30  ;;  %p461_p2 = scmp.lt.u32.totalorder %s457_s30, %s568_s4 }
 0x1fa   :  { %p463_p3 = pnand %p461_p2, %p458_p1 }
 0x1fc   :  { %466 = shalt.err (!%p463_p3)
}
 0x1fd   :  { %254 = dma.vmem_to_hbm [thread:$0]  %s252_s27, 32, %s568_s4, [#allocation4]  }
 0x1fe   :  { %471 = dma.done.wait [#allocation4], 32  }
 0x1ff   :  { %472 = vsyncadd [#allocation4], 4294967264 }
 0x200   :  { %258 = vsyncpa [#allocation3], 1 }
 0x201   :  { %259 = vsyncpa [#allocation6], 1 }
 0x202   :  { %260 = vsyncpa [#allocation4], 1 }

</bundles_post_ra>
